<compile_context>
chip_gen: v7x
topology: tpu7x:2x2x1
jax: 0.10.0
libtpu: 0.0.40
codegen_flags: <defaults>
</compile_context>

<pallas_src>
import functools

import jax
import jax.numpy as jnp
from jax.experimental import pallas as pl
from jax.experimental.pallas import tpu as pltpu


def _round_up(n: int, m: int) -> int:
    return ((n + m - 1) // m) * m


def _fused_mlp_kernel(*refs, n_hidden: int):
    """softmax(W_out @ relu(... relu(W_in @ x + b_in) ...) + b_out), fully fused.

    refs = (x, w_in, b_in, [w_h_stack, b_h_stack,] w_out, b_out, out)
      x        : (TM, din)            bf16
      w_in     : (din, hid_p)         bf16
      b_in     : (1, hid_p)           f32
      w_h_stack: (n_hidden, hid_p, hid_p) bf16   (only if n_hidden > 0)
      b_h_stack: (n_hidden, 1, hid_p)     f32    (only if n_hidden > 0)
      w_out    : (hid_p, dout)        bf16
      b_out    : (1, dout)            f32
      out      : (TM, dout)           f32
    All weight blocks are whole-array, constant-index -> DMA'd once, resident.
    """
    x_ref, w_in_ref, b_in_ref = refs[:3]
    if n_hidden > 0:
        w_h_ref, b_h_ref = refs[3:5]
        w_out_ref, b_out_ref, out_ref = refs[5:8]
    else:
        w_out_ref, b_out_ref, out_ref = refs[3:6]

    # Input layer: bf16-fed MXU, f32 accumulate, f32 bias + ReLU, carry bf16.
    h = jnp.dot(x_ref[...], w_in_ref[...], preferred_element_type=jnp.float32)
    h = jnp.maximum(h + b_in_ref[...], 0.0).astype(jnp.bfloat16)
    # TODO(synk): stochastic != None noise path not implemented; with
    # stochastic=None, epsilon == 0 and `h = h + epsilon` is a no-op (elided).

    if n_hidden > 0:
        def layer(l, h_bf16):
            y = jnp.dot(h_bf16, w_h_ref[l], preferred_element_type=jnp.float32)
            return jnp.maximum(y + b_h_ref[l], 0.0).astype(jnp.bfloat16)
        h = jax.lax.fori_loop(0, n_hidden, layer, h, unroll=True)

    # Output layer + exact softmax over the real (un-padded) output columns.
    y = jnp.dot(h, w_out_ref[...], preferred_element_type=jnp.float32)
    y = y + b_out_ref[...]
    y = y - jnp.max(y, axis=-1, keepdims=True)
    e = jnp.exp(y)
    out_ref[...] = (e / jnp.sum(e, axis=-1, keepdims=True)).astype(out_ref.dtype)


def prepare_mlp_params(params, lane_align: int = 128):
    """One-time weight prep (hoisted out of the per-call path).

    Pads the hidden dimension to a lane-aligned width (zero padding is exact
    for Linear+ReLU), casts weights to bf16 (native MXU rate on v6e/v7x,
    halves weight DMA), keeps biases f32, and stacks the hidden layers.
    `lane_align=256` can be used on v6e/v7x to match the 256-wide MXU.
    Input (din) and output (dout) dims are left at their natural sizes.
    """
    (w_in, b_in), *rest = params
    hidden_params, (w_out, b_out) = rest[:-1], rest[-1]
    n_hidden = len(hidden_params)

    hid = w_in.shape[1]
    hid_p = _round_up(hid, lane_align)

    def pad_w(w, rows, cols):
        r, c = w.shape
        return jnp.pad(w, ((0, rows - r), (0, cols - c))).astype(jnp.bfloat16)

    def pad_b(b, cols):
        return jnp.pad(b, (0, cols - b.shape[0])).reshape(1, cols).astype(jnp.float32)

    prep = {
        "n_hidden": n_hidden,
        "w_in": pad_w(w_in, w_in.shape[0], hid_p),
        "b_in": pad_b(b_in, hid_p),
        "w_out": pad_w(w_out, hid_p, w_out.shape[1]),
        "b_out": pad_b(b_out, w_out.shape[1]),
    }
    if n_hidden > 0:
        prep["w_h"] = jnp.stack([pad_w(w, hid_p, hid_p) for (w, _) in hidden_params])
        prep["b_h"] = jnp.stack([pad_b(b, hid_p) for (_, b) in hidden_params])
    return prep


def mlp_forward(x, prep):
    """Forward pass with pre-prepared (padded, bf16) parameters."""
    n_hidden = prep["n_hidden"]
    w_in, b_in = prep["w_in"], prep["b_in"]
    w_out, b_out = prep["w_out"], prep["b_out"]

    B, din = x.shape
    hid_p = w_in.shape[1]
    dout = w_out.shape[1]

    # Batch tiling: single full block at small B (exempt from the 8-divisibility
    # rule), 128-row tiles + "parallel" semantics at large B (pipelining /
    # v7x megacore).  Pallas masks the partial last block.
    tm = B if B <= 128 else 128
    grid = (pl.cdiv(B, tm),)

    # Only per-call wrapper op: cast x to bf16 (halves its DMA, removes the
    # in-kernel layer-0 cast).
    x_bf16 = x.astype(jnp.bfloat16)

    in_specs = [
        pl.BlockSpec((tm, din), lambda i: (i, 0)),          # x: tiled on batch
        pl.BlockSpec(w_in.shape, lambda i: (0, 0)),          # weights: constant
        pl.BlockSpec(b_in.shape, lambda i: (0, 0)),          #   index -> resident
    ]
    inputs = [x_bf16, w_in, b_in]
    if n_hidden > 0:
        w_h, b_h = prep["w_h"], prep["b_h"]
        in_specs += [
            pl.BlockSpec(w_h.shape, lambda i: (0, 0, 0)),
            pl.BlockSpec(b_h.shape, lambda i: (0, 0, 0)),
        ]
        inputs += [w_h, b_h]
    in_specs += [
        pl.BlockSpec(w_out.shape, lambda i: (0, 0)),
        pl.BlockSpec(b_out.shape, lambda i: (0, 0)),
    ]
    inputs += [w_out, b_out]

    out_specs = pl.BlockSpec((tm, dout), lambda i: (i, 0))

    flops = 2 * B * (din * hid_p + n_hidden * hid_p * hid_p + hid_p * dout)
    bytes_accessed = sum(int(a.size) * a.dtype.itemsize for a in inputs) + B * dout * 4
    cost = pl.CostEstimate(flops=flops,
                           transcendentals=B * dout,
                           bytes_accessed=bytes_accessed)

    kernel = functools.partial(_fused_mlp_kernel, n_hidden=n_hidden)

    out = pl.pallas_call(
        kernel,
        out_shape=jax.ShapeDtypeStruct((B, dout), jnp.float32),
        grid=grid,
        in_specs=in_specs,
        out_specs=out_specs,
        cost_estimate=cost,
        compiler_params=pltpu.CompilerParams(
            dimension_semantics=("parallel",),
            # 64 MiB scoped VMEM is safe on v5e/v6e/v7x; weights here are tiny.
            # TODO(synk): tier per generation (v7x: 64 MiB physical) and switch
            # to a K/N-tiled accumulator path when bf16 weights outgrow VMEM.
            vmem_limit_bytes=64 * 1024 * 1024),
    )(*inputs)
    return out


def init_mlp_params(key, input_dim, hidden_dim, output_dim, n_layers):
    """Deterministic parameter init (PyTorch nn.Linear-style uniform bounds).
    Weights are stored already transposed: [D_in, D_out]."""
    params = []
    dims = [(input_dim, hidden_dim)]
    dims += [(hidden_dim, hidden_dim) for _ in range(n_layers)]
    dims += [(hidden_dim, output_dim)]
    for (din, dout) in dims:
        key, kw, kb = jax.random.split(key, 3)
        bound = 1.0 / jnp.sqrt(din)
        w = jax.random.uniform(kw, (din, dout), jnp.float32, -bound, bound)
        b = jax.random.uniform(kb, (dout,), jnp.float32, -bound, bound)
        params.append((w, b))
    return params


def _mlp_forward_ref(x, params):
    """Pure-JAX f32 reference mirroring MLP.forward (for correctness check)."""
    (w_in, b_in), *rest = params
    hidden_params, (w_out, b_out) = rest[:-1], rest[-1]
    h = jnp.maximum(x @ w_in + b_in, 0.0)
    for (w_h, b_h) in hidden_params:
        h = jnp.maximum(h @ w_h + b_h, 0.0)
    return jax.nn.softmax(h @ w_out + b_out, axis=-1)


if __name__ == "__main__":
    key = jax.random.PRNGKey(0)
    k_x, k_p = jax.random.split(key)

    batch = 2
    input_dim, hidden_dim, output_dim = 16, 32, 8
    n_layers = 2

    x = jax.random.normal(k_x, (batch, input_dim), jnp.float32)
    params = init_mlp_params(k_p, input_dim, hidden_dim, output_dim, n_layers)

    # One-time weight prep (padding + bf16 cast) -- hoisted out of the hot path.
    prep = prepare_mlp_params(params)

    out = jax.block_until_ready(mlp_forward(x, prep))

    assert out.shape == (batch, output_dim)
    # Exact softmax divide -> rows sum to 1 up to f32 rounding.
    assert jnp.allclose(jnp.sum(out, axis=-1), 1.0, atol=1e-4)
    # bf16-fed MXU / bf16 inter-layer activations (f32 accumulate) vs f32 ref.
    ref = _mlp_forward_ref(x, params)
    assert jnp.allclose(out, ref, atol=5e-2, rtol=5e-2)
    print("KERNEL_OK")
</pallas_src>

<mosaic_0001>
module attributes {stable_mosaic.version = 11 : i64} {
  func.func @_fused_mlp_kernel(%arg0: i32, %arg1: memref<2x16xbf16, #tpu.memory_space<vmem>>, %arg2: memref<16x128xbf16, #tpu.memory_space<vmem>>, %arg3: memref<1x128xf32, #tpu.memory_space<vmem>>, %arg4: memref<2x128x128xbf16, #tpu.memory_space<vmem>>, %arg5: memref<2x1x128xf32, #tpu.memory_space<vmem>>, %arg6: memref<128x8xbf16, #tpu.memory_space<vmem>>, %arg7: memref<1x8xf32, #tpu.memory_space<vmem>>, %arg8: memref<2x8xf32, #tpu.memory_space<vmem>>) attributes {dimension_semantics = [#tpu.dimension_semantics<parallel>], iteration_bounds = array<i64: 1>, scalar_prefetch = 0 : i64, scratch_operands = 0 : i64, tpu.core_type = #tpu.core_type<tc>, window_params = [{transform_indices = @transform_0, window_bounds = array<i64: 2, 16>}, {pipeline_mode = #tpu.pipeline_mode<synchronous>, transform_indices = @transform_1, window_bounds = array<i64: 16, 128>}, {pipeline_mode = #tpu.pipeline_mode<synchronous>, transform_indices = @transform_2, window_bounds = array<i64: 1, 128>}, {pipeline_mode = #tpu.pipeline_mode<synchronous>, transform_indices = @transform_3, window_bounds = array<i64: 2, 128, 128>}, {pipeline_mode = #tpu.pipeline_mode<synchronous>, transform_indices = @transform_4, window_bounds = array<i64: 2, 1, 128>}, {pipeline_mode = #tpu.pipeline_mode<synchronous>, transform_indices = @transform_5, window_bounds = array<i64: 128, 8>}, {pipeline_mode = #tpu.pipeline_mode<synchronous>, transform_indices = @transform_6, window_bounds = array<i64: 1, 8>}, {transform_indices = @transform_7, window_bounds = array<i64: 2, 8>}]} {
    %c0 = arith.constant 0 : index
    %c0_0 = arith.constant 0 : index
    %0 = vector.load %arg1[%c0, %c0_0] : memref<2x16xbf16, #tpu.memory_space<vmem>>, vector<2x16xbf16>
    %c0_1 = arith.constant 0 : index
    %c0_2 = arith.constant 0 : index
    %1 = vector.load %arg2[%c0_1, %c0_2] : memref<16x128xbf16, #tpu.memory_space<vmem>>, vector<16x128xbf16>
    %cst = arith.constant dense<0.000000e+00> : vector<2x128xf32>
    %2 = tpu.matmul %0, %1, %cst {dimension_numbers = #tpu.dot_dimension_numbers<[1], [0], [0], [1], [0, 0, 1, 1], [], []>} : vector<2x16xbf16>, vector<16x128xbf16>, vector<2x128xf32> -> vector<2x128xf32>
    %c0_3 = arith.constant 0 : index
    %c0_4 = arith.constant 0 : index
    %3 = vector.load %arg3[%c0_3, %c0_4] : memref<1x128xf32, #tpu.memory_space<vmem>>, vector<1x128xf32>
    %4 = vector.broadcast %3 : vector<1x128xf32> to vector<2x128xf32>
    %5 = arith.addf %2, %4 : vector<2x128xf32>
    %cst_5 = arith.constant 0.000000e+00 : f32
    %6 = vector.broadcast %cst_5 : f32 to vector<2x128xf32>
    %7 = arith.maximumf %5, %6 : vector<2x128xf32>
    %8 = arith.truncf %7 : vector<2x128xf32> to vector<2x128xbf16>
    %c0_i32 = arith.constant 0 : i32
    %9 = arith.index_cast %c0_i32 : i32 to index
    %c0_6 = arith.constant 0 : index
    %c0_7 = arith.constant 0 : index
    %10 = vector.load %arg4[%9, %c0_6, %c0_7] : memref<2x128x128xbf16, #tpu.memory_space<vmem>>, vector<1x128x128xbf16>
    %11 = vector.shape_cast %10 : vector<1x128x128xbf16> to vector<128x128xbf16>
    %cst_8 = arith.constant dense<0.000000e+00> : vector<2x128xf32>
    %12 = tpu.matmul %8, %11, %cst_8 {dimension_numbers = #tpu.dot_dimension_numbers<[1], [0], [0], [1], [0, 0, 1, 1], [], []>} : vector<2x128xbf16>, vector<128x128xbf16>, vector<2x128xf32> -> vector<2x128xf32>
    %13 = arith.index_cast %c0_i32 : i32 to index
    %c0_9 = arith.constant 0 : index
    %c0_10 = arith.constant 0 : index
    %14 = vector.load %arg5[%13, %c0_9, %c0_10] : memref<2x1x128xf32, #tpu.memory_space<vmem>>, vector<1x1x128xf32>
    %15 = vector.shape_cast %14 : vector<1x1x128xf32> to vector<1x128xf32>
    %16 = vector.broadcast %15 : vector<1x128xf32> to vector<2x128xf32>
    %17 = arith.addf %12, %16 : vector<2x128xf32>
    %cst_11 = arith.constant 0.000000e+00 : f32
    %18 = vector.broadcast %cst_11 : f32 to vector<2x128xf32>
    %19 = arith.maximumf %17, %18 : vector<2x128xf32>
    %20 = arith.truncf %19 : vector<2x128xf32> to vector<2x128xbf16>
    %c1_i32 = arith.constant 1 : i32
    %21 = arith.index_cast %c1_i32 : i32 to index
    %c0_12 = arith.constant 0 : index
    %c0_13 = arith.constant 0 : index
    %22 = vector.load %arg4[%21, %c0_12, %c0_13] : memref<2x128x128xbf16, #tpu.memory_space<vmem>>, vector<1x128x128xbf16>
    %23 = vector.shape_cast %22 : vector<1x128x128xbf16> to vector<128x128xbf16>
    %cst_14 = arith.constant dense<0.000000e+00> : vector<2x128xf32>
    %24 = tpu.matmul %20, %23, %cst_14 {dimension_numbers = #tpu.dot_dimension_numbers<[1], [0], [0], [1], [0, 0, 1, 1], [], []>} : vector<2x128xbf16>, vector<128x128xbf16>, vector<2x128xf32> -> vector<2x128xf32>
    %25 = arith.index_cast %c1_i32 : i32 to index
    %c0_15 = arith.constant 0 : index
    %c0_16 = arith.constant 0 : index
    %26 = vector.load %arg5[%25, %c0_15, %c0_16] : memref<2x1x128xf32, #tpu.memory_space<vmem>>, vector<1x1x128xf32>
    %27 = vector.shape_cast %26 : vector<1x1x128xf32> to vector<1x128xf32>
    %28 = vector.broadcast %27 : vector<1x128xf32> to vector<2x128xf32>
    %29 = arith.addf %24, %28 : vector<2x128xf32>
    %cst_17 = arith.constant 0.000000e+00 : f32
    %30 = vector.broadcast %cst_17 : f32 to vector<2x128xf32>
    %31 = arith.maximumf %29, %30 : vector<2x128xf32>
    %32 = arith.truncf %31 : vector<2x128xf32> to vector<2x128xbf16>
    %c2_i32 = arith.constant 2 : i32
    %c0_18 = arith.constant 0 : index
    %c0_19 = arith.constant 0 : index
    %33 = vector.load %arg6[%c0_18, %c0_19] : memref<128x8xbf16, #tpu.memory_space<vmem>>, vector<128x8xbf16>
    %cst_20 = arith.constant dense<0.000000e+00> : vector<2x8xf32>
    %34 = tpu.matmul %32, %33, %cst_20 {dimension_numbers = #tpu.dot_dimension_numbers<[1], [0], [0], [1], [0, 0, 1, 1], [], []>} : vector<2x128xbf16>, vector<128x8xbf16>, vector<2x8xf32> -> vector<2x8xf32>
    %c0_21 = arith.constant 0 : index
    %c0_22 = arith.constant 0 : index
    %35 = vector.load %arg7[%c0_21, %c0_22] : memref<1x8xf32, #tpu.memory_space<vmem>>, vector<1x8xf32>
    %36 = vector.broadcast %35 : vector<1x8xf32> to vector<2x8xf32>
    %37 = arith.addf %34, %36 : vector<2x8xf32>
    %cst_23 = arith.constant dense<0xFF800000> : vector<2xf32>
    %38 = vector.multi_reduction <maximumf>, %37, %cst_23 [1] : vector<2x8xf32> to vector<2xf32>
    %39 = vector.shape_cast %38 : vector<2xf32> to vector<2x1xf32>
    %40 = vector.broadcast %39 : vector<2x1xf32> to vector<2x8xf32>
    %41 = arith.subf %37, %40 : vector<2x8xf32>
    %42 = math.exp %41 : vector<2x8xf32>
    %cst_24 = arith.constant dense<0.000000e+00> : vector<2xf32>
    %43 = vector.multi_reduction <add>, %42, %cst_24 [1] : vector<2x8xf32> to vector<2xf32>
    %44 = vector.shape_cast %43 : vector<2xf32> to vector<2x1xf32>
    %45 = vector.broadcast %44 : vector<2x1xf32> to vector<2x8xf32>
    %46 = arith.divf %42, %45 : vector<2x8xf32>
    %c0_25 = arith.constant 0 : index
    %c0_26 = arith.constant 0 : index
    %47 = vector.load %arg8[%c0_25, %c0_26] : memref<2x8xf32, #tpu.memory_space<vmem>>, vector<2x8xf32>
    tpu.vector_store %arg8[%c0_25, %c0_26], %46 {strides = array<i32>} : memref<2x8xf32, #tpu.memory_space<vmem>>, vector<2x8xf32>,
    return
  }
  func.func @transform_0(%arg0: i32) -> (i32, i32) {
    %c0_i32 = arith.constant 0 : i32
    %c0_i32_0 = arith.constant 0 : i32
    return %arg0, %c0_i32 : i32, i32
  }
  func.func @transform_1(%arg0: i32) -> (i32, i32) {
    %c0_i32 = arith.constant 0 : i32
    %c0_i32_0 = arith.constant 0 : i32
    %c0_i32_1 = arith.constant 0 : i32
    return %c0_i32, %c0_i32_0 : i32, i32
  }
  func.func @transform_2(%arg0: i32) -> (i32, i32) {
    %c0_i32 = arith.constant 0 : i32
    %c0_i32_0 = arith.constant 0 : i32
    %c0_i32_1 = arith.constant 0 : i32
    return %c0_i32, %c0_i32_0 : i32, i32
  }
  func.func @transform_3(%arg0: i32) -> (i32, i32, i32) {
    %c0_i32 = arith.constant 0 : i32
    %c0_i32_0 = arith.constant 0 : i32
    %c0_i32_1 = arith.constant 0 : i32
    %c0_i32_2 = arith.constant 0 : i32
    return %c0_i32, %c0_i32_0, %c0_i32_1 : i32, i32, i32
  }
  func.func @transform_4(%arg0: i32) -> (i32, i32, i32) {
    %c0_i32 = arith.constant 0 : i32
    %c0_i32_0 = arith.constant 0 : i32
    %c0_i32_1 = arith.constant 0 : i32
    %c0_i32_2 = arith.constant 0 : i32
    return %c0_i32, %c0_i32_0, %c0_i32_1 : i32, i32, i32
  }
  func.func @transform_5(%arg0: i32) -> (i32, i32) {
    %c0_i32 = arith.constant 0 : i32
    %c0_i32_0 = arith.constant 0 : i32
    %c0_i32_1 = arith.constant 0 : i32
    return %c0_i32, %c0_i32_0 : i32, i32
  }
  func.func @transform_6(%arg0: i32) -> (i32, i32) {
    %c0_i32 = arith.constant 0 : i32
    %c0_i32_0 = arith.constant 0 : i32
    %c0_i32_1 = arith.constant 0 : i32
    return %c0_i32, %c0_i32_0 : i32, i32
  }
  func.func @transform_7(%arg0: i32) -> (i32, i32) {
    %c0_i32 = arith.constant 0 : i32
    %c0_i32_0 = arith.constant 0 : i32
    return %arg0, %c0_i32 : i32, i32
  }
}

</mosaic_0001>

<bundles_post_ra>
// kernel: tpu_custom_call.1
= control target key start
LH: loop header
LB: loop body
LE: loop exit
PB: predicated region body
PF: predicated region fallthrough
CT: control target
= control target key end

     0   :  { %12 = vsyncpa [#allocation3], 0  ;;  %s1098_s0 = inlined_call_operand.hbm [shape: bf16[2,16], index: 0, kind: input, shape index: {}]   ;;  %s1099_s1 = inlined_call_operand.hbm [shape: bf16[16,128], index: 1, kind: input, shape index: {}]   ;;  %s1100_s2 = inlined_call_operand.hbm [shape: f32[1,128], index: 2, kind: input, shape index: {}]   ;;  %s1101_s3 = inlined_call_operand.hbm [shape: bf16[2,128,128], index: 3, kind: input, shape index: {}]   ;;  %s1102_s4 = inlined_call_operand.hbm [shape: f32[2,1,128], index: 4, kind: input, shape index: {}]   ;;  %s1103_s5 = inlined_call_operand.hbm [shape: bf16[128,8], index: 5, kind: input, shape index: {}]   ;;  %s1104_s6 = inlined_call_operand.hbm [shape: f32[1,8], index: 6, kind: input, shape index: {}]   ;;  %s1105_s7 = inlined_call_operand.hbm [shape: f32[2,8], index: 7, kind: output, shape index: {}]  }
   0x1   :  { %13 = vsyncpa [#allocation6], 0 }
   0x2   :  { %14 = vsyncpa [#allocation9], 0 }
   0x3   :  { %15 = vsyncpa [#allocation12], 0 }
   0x4   :  { %16 = vsyncpa [#allocation4], 0  ;;  %s903_s24 = smov [#allocation5]   ;;  %s717_s28 = scalar_lea.hbm %s1099_s1, 128 }
   0x5   :  { %s32_s25 = sshll.u32 %s903_s24, 4  ;;  %p718_p0 = scmp.ne.s32.totalorder %s1099_s1, %s717_s28  ;;  %s33_s25 = int_to_ptr.vmem [resolvable:$true] %s32_s25 }
   0x6   :  { %p721_p1 = scmp.lt.u32.totalorder %s717_s28, %s1099_s1 }
   0x8   :  { %p723_p2 = pnand %p721_p1, %p718_p0 }
   0xa   :  { %726 = shalt.err (!%p723_p2)
}
   0xb   :  { %s727_s10 = scalar_lea.vmem %s33_s25, 128  ;;  %p732_p4 = scmp.lt.s32.totalorder %s33_s25, %s33_s25 }
   0xc   :  { %p728_p3 = scmp.ne.s32.totalorder %s33_s25, %s727_s10  ;;  %p733_p5 = scmp.lt.s32.totalorder %s727_s10, %s727_s10 }
   0xe   :  { %p734_p6 = por %p733_p5, %p732_p4 }
  0x10   :  { %p735_p7 = pnand %p734_p6, %p728_p3 }
  0x12   :  { %738 = shalt.err (!%p735_p7)
}
  0x13   :  { %s904_s11 = smov 64   ;;  %s905_s12 = smov 4  }
  0x14   :  { %38 = dma.hbm_to_vmem [thread:$0]  %s1099_s1, 128, %s33_s25, [#allocation6], %s904_s11, %s904_s11, %s905_s12  }
  0x15   :  { %s906_s15 = smov [#allocation8]   ;;  %s907_s17 = smov [#allocation11]  }
  0x16   :  { %s54_s16 = sshll.u32 %s906_s15, 4  ;;  %s78_s18 = sshll.u32 %s907_s17, 4  ;;  %s55_s16 = int_to_ptr.vmem [resolvable:$true] %s54_s16  ;;  %s79_s18 = int_to_ptr.vmem [resolvable:$true] %s78_s18 }
  0x17   :  { %s739_s21 = scalar_lea.hbm %s1101_s3, 2048 }
  0x18   :  { %p740_p8 = scmp.ne.s32.totalorder %s1101_s3, %s739_s21  ;;  %p743_p9 = scmp.lt.u32.totalorder %s739_s21, %s1101_s3 }
  0x1a   :  { %p745_p10 = pnand %p743_p9, %p740_p8 }
  0x1c   :  { %748 = shalt.err (!%p745_p10)
}
  0x1d   :  { %s749_s1 = scalar_lea.vmem %s55_s16, 2048  ;;  %p754_p12 = scmp.lt.s32.totalorder %s55_s16, %s55_s16 }
  0x1e   :  { %p750_p11 = scmp.ne.s32.totalorder %s55_s16, %s749_s1  ;;  %p755_p13 = scmp.lt.s32.totalorder %s749_s1, %s749_s1 }
  0x20   :  { %p756_p0 = por %p755_p13, %p754_p12 }
  0x22   :  { %p757_p1 = pnand %p756_p0, %p750_p11 }
  0x24   :  { %760 = shalt.err (!%p757_p1)
}
  0x25   :  { %60 = dma.hbm_to_vmem [thread:$0]  %s1101_s3, 2048, %s55_s16, [#allocation9], %s904_s11, %s904_s11, %s905_s12  }
  0x26   :  { %s761_s30 = scalar_lea.hbm %s1103_s5, 1024 }
  0x27   :  { %p762_p2 = scmp.ne.s32.totalorder %s1103_s5, %s761_s30  ;;  %p765_p3 = scmp.lt.u32.totalorder %s761_s30, %s1103_s5 }
  0x29   :  { %p767_p4 = pnand %p765_p3, %p762_p2 }
  0x2b   :  { %770 = shalt.err (!%p767_p4)
}
  0x2c   :  { %s771_s14 = scalar_lea.vmem %s79_s18, 1024  ;;  %p776_p6 = scmp.lt.s32.totalorder %s79_s18, %s79_s18 }
  0x2d   :  { %p772_p5 = scmp.ne.s32.totalorder %s79_s18, %s771_s14  ;;  %p777_p7 = scmp.lt.s32.totalorder %s771_s14, %s771_s14 }
  0x2f   :  { %p778_p8 = por %p777_p7, %p776_p6 }
  0x31   :  { %p779_p9 = pnand %p778_p8, %p772_p5 }
  0x33   :  { %782 = shalt.err (!%p779_p9)
}
  0x34   :  { %84 = dma.hbm_to_vmem [thread:$0]  %s1103_s5, 1024, %s79_s18, [#allocation12], %s904_s11, %s904_s11, %s905_s12  }
  0x35   :  { %s908_s16 = smov [#allocation2]   ;;  %s909_s19 = smov [#allocation7]  }
  0x36   :  { %s23_s17 = sshll.u32 %s908_s16, 4  ;;  %s45_s20 = sshll.u32 %s909_s19, 4  ;;  %s24_s17 = int_to_ptr.vmem [resolvable:$true] %s23_s17  ;;  %s46_s20 = int_to_ptr.vmem [resolvable:$true] %s45_s20 }
  0x37   :  { %s783_s23 = scalar_lea.hbm %s1098_s0, 16 }
  0x38   :  { %p784_p10 = scmp.ne.s32.totalorder %s1098_s0, %s783_s23  ;;  %p787_p11 = scmp.lt.u32.totalorder %s783_s23, %s1098_s0 }
  0x3a   :  { %p789_p12 = pnand %p787_p11, %p784_p10 }
  0x3c   :  { %792 = shalt.err (!%p789_p12)
}
  0x3d   :  { %s793_s5 = scalar_lea.vmem %s24_s17, 16  ;;  %s797_s11 = scalar_lea.vmem %s24_s17, 32 }
  0x3e   :  { %p794_p13 = scmp.ne.s32.totalorder %s24_s17, %s793_s5  ;;  %p798_p0 = scmp.lt.s32.totalorder %s24_s17, %s24_s17 }
  0x3f   :  { %p799_p1 = scmp.lt.s32.totalorder %s797_s11, %s793_s5 }
  0x41   :  { %p800_p2 = por %p799_p1, %p798_p0 }
  0x43   :  { %p801_p3 = pnand %p800_p2, %p794_p13 }
  0x45   :  { %804 = shalt.err (!%p801_p3)
}
  0x46   :  { %26 = dma.hbm_to_vmem [thread:$0]  %s1098_s0, 16, %s24_s17, [#allocation3]  }
  0x47   :  { %s805_s29 = scalar_lea.hbm %s1100_s2, 16 }
  0x48   :  { %p806_p4 = scmp.ne.s32.totalorder %s1100_s2, %s805_s29  ;;  %p809_p5 = scmp.lt.u32.totalorder %s805_s29, %s1100_s2 }
  0x4a   :  { %p811_p6 = pnand %p809_p5, %p806_p4 }
  0x4c   :  { %814 = shalt.err (!%p811_p6)
}
  0x4d   :  { %s815_s13 = scalar_lea.vmem %s46_s20, 16  ;;  %s819_s14 = scalar_lea.vmem %s46_s20, 32 }
  0x4e   :  { %p816_p7 = scmp.ne.s32.totalorder %s46_s20, %s815_s13  ;;  %p820_p8 = scmp.lt.s32.totalorder %s46_s20, %s46_s20 }
  0x4f   :  { %p821_p9 = scmp.lt.s32.totalorder %s819_s14, %s815_s13 }
  0x51   :  { %p822_p10 = por %p821_p9, %p820_p8 }
  0x53   :  { %p823_p11 = pnand %p822_p10, %p816_p7 }
  0x55   :  { %826 = shalt.err (!%p823_p11)
}
  0x56   :  { %48 = dma.hbm_to_vmem [thread:$0]  %s1100_s2, 16, %s46_s20, [#allocation6]  }
  0x57   :  { %s910_s15 = smov [#allocation10]   ;;  %s827_s21 = scalar_lea.hbm %s1102_s4, 32 }
  0x58   :  { %s66_s16 = sshll.u32 %s910_s15, 4  ;;  %p828_p12 = scmp.ne.s32.totalorder %s1102_s4, %s827_s21  ;;  %s67_s16 = int_to_ptr.vmem [resolvable:$true] %s66_s16 }
  0x59   :  { %p831_p13 = scmp.lt.u32.totalorder %s827_s21, %s1102_s4 }
  0x5b   :  { %p833_p0 = pnand %p831_p13, %p828_p12 }
  0x5d   :  { %836 = shalt.err (!%p833_p0)
}
  0x5e   :  { %s837_s1 = scalar_lea.vmem %s67_s16, 32  ;;  %p842_p2 = scmp.lt.s32.totalorder %s67_s16, %s67_s16 }
  0x5f   :  { %p838_p1 = scmp.ne.s32.totalorder %s67_s16, %s837_s1  ;;  %p843_p3 = scmp.lt.s32.totalorder %s837_s1, %s837_s1 }
  0x61   :  { %p844_p4 = por %p843_p3, %p842_p2 }
  0x63   :  { %p845_p5 = pnand %p844_p4, %p838_p1 }
  0x65   :  { %848 = shalt.err (!%p845_p5)
}
  0x66   :  { %s911_s2 = smov 16   ;;  %s912_s20 = smov 1  }
  0x67   :  { %72 = dma.hbm_to_vmem [thread:$0]  %s1102_s4, 32, %s67_s16, [#allocation9], %s911_s2, %s911_s2, %s912_s20  }
  0x68   :  { %s913_s11 = smov [#allocation13]   ;;  %s849_s28 = scalar_lea.hbm %s1104_s6, 16 }
  0x69   :  { %s91_s12 = sshll.u32 %s913_s11, 4  ;;  %p850_p6 = scmp.ne.s32.totalorder %s1104_s6, %s849_s28  ;;  %s92_s12 = int_to_ptr.vmem [resolvable:$true] %s91_s12 }
  0x6a   :  { %p853_p7 = scmp.lt.u32.totalorder %s849_s28, %s1104_s6 }
  0x6c   :  { %p855_p8 = pnand %p853_p7, %p850_p6 }
  0x6e   :  { %858 = shalt.err (!%p855_p8)
}
  0x6f   :  { %s859_s10 = scalar_lea.vmem %s92_s12, 16  ;;  %s863_s4 = scalar_lea.vmem %s92_s12, 32 }
  0x70   :  { %p860_p9 = scmp.ne.s32.totalorder %s92_s12, %s859_s10  ;;  %p864_p10 = scmp.lt.s32.totalorder %s92_s12, %s92_s12 }
  0x71   :  { %p865_p11 = scmp.lt.s32.totalorder %s863_s4, %s859_s10 }
  0x73   :  { %p866_p12 = por %p865_p11, %p864_p10 }
  0x75   :  { %p867_p13 = pnand %p866_p12, %p860_p9 }
  0x77   :  { %870 = shalt.err (!%p867_p13)
}
  0x78   :  { %94 = dma.hbm_to_vmem [thread:$0]  %s1104_s6, 16, %s92_s12, [#allocation12]  }
  0x79   :  { %893 = dma.done.wait [#allocation3], 16  }
  0x7a   :  { %894 = vsyncadd [#allocation3], 4294967280 }
  0x7b   :  { %895 = dma.done.wait [#allocation6], 144  }
  0x7c   :  { %896 = vsyncadd [#allocation6], 4294967152 }
  0x7d   :  { %897 = dma.done.wait [#allocation9], 2080  }
  0x7e   :  { %898 = vsyncadd [#allocation9], 4294965216 }
  0x7f   :  { %899 = dma.done.wait [#allocation12], 1040  }
  0x80   :  { %900 = vsyncadd [#allocation12], 4294966256  ;;  %v914_v0 = vmov 0.0   ;;  %vm915_vm0 = vmmov 0   ;;  %v688_v1 = vld [vmem:[#allocation5] sm:$0xff]   ;;  %vm133_vm1 = vcmask 130048  }
  0x81   :  { %608 = vmatprep.subr.bf16.mxu0 %v914_v0  ;;  %610 = vmatprep.mubr.msk.bf16.mxu0 %vm915_vm0, %v914_v0  ;;  %v117_v2 = vld [vmem:[#allocation2] sm:$0x1]  ;;  %v689_v3 = vld [vmem:[#allocation8] sm:$0xff]   ;;  %v690_v4 = vld [vmem:[#allocation8 + $0x8] sm:$0xff]   ;;  %vm518_vm2 = vcmask 58368   ;;  %s916_s6 = smov [#allocation14]  }
  0x82   :  { %614 = vmatprep.subr.bf16.mxu1 %v914_v0  ;;  %630 = vmatprep.mubr.msk.bf16.mxu1 %vm915_vm0, %v914_v0  ;;  %v691_v5 = vld [vmem:[#allocation8 + $0x10] sm:$0xff]   ;;  %v692_v6 = vld [vmem:[#allocation8 + $0x18] sm:$0xff]   ;;  %v693_v7 = vld [vmem:[#allocation8 + $0x20] sm:$0xff]   ;;  %s537_s0 = sshll.u32 %s916_s6, 4  ;;  %s538_s0 = int_to_ptr.vmem [resolvable:$true] %s537_s0 }
  0x83   :  { %609 = vmatpush3.bf16.msra.mxu0 %v688_v1  ;;  %615 = vmatpush3.bf16.msra.mxu1 %v689_v3  ;;  %v694_v8 = vld [vmem:[#allocation8 + $0x28] sm:$0xff]   ;;  %v695_v9 = vld [vmem:[#allocation8 + $0x30] sm:$0xff]   ;;  %v696_v10 = vld [vmem:[#allocation8 + $0x38] sm:$0xff]   ;;  %s871_s3 = scalar_lea.vmem %s538_s0, 32  ;;  %p876_p1 = scmp.lt.s32.totalorder %s538_s0, %s538_s0 }
  0x84   :  { %634 = vmatprep.subr.bf16.mxu0 %v914_v0  ;;  %616 = vmatprep.subr.bf16.mxu1 %v914_v0  ;;  %v697_v11 = vld [vmem:[#allocation8 + $0x40] sm:$0xff]   ;;  %v698_v12 = vld [vmem:[#allocation8 + $0x48] sm:$0xff]   ;;  %v699_v13 = vld [vmem:[#allocation8 + $0x50] sm:$0xff]   ;;  %p872_p0 = scmp.ne.s32.totalorder %s538_s0, %s871_s3  ;;  %p877_p2 = scmp.lt.s32.totalorder %s871_s3, %s871_s3 }
  0x85   :  { %v700_v14 = vld [vmem:[#allocation8 + $0x58] sm:$0xff]   ;;  %v701_v15 = vld [vmem:[#allocation8 + $0x60] sm:$0xff]   ;;  %v702_v16 = vld [vmem:[#allocation8 + $0x68] sm:$0xff]  }
  0x86   :  { %611 = vmatmul.mubr.msk.bf16.vlgmr.msra.gmra.mrb[0].mxu0 %vm133_vm1, %v117_v2  ;;  %v549_v17 = vld [vmem:[#allocation7] ss:$0 sm:$0xff]  ;;  %v703_v25 = vld [vmem:[#allocation8 + $0x70] sm:$0xff]   ;;  %v705_v27 = vld [vmem:[#allocation11] sm:$0xff]   ;;  %p878_p3 = por %p877_p2, %p876_p1 }
  0x87   :  { %650 = vmatprep.mubr.msk.bf16.mxu0 %vm915_vm0, %v914_v0  ;;  %617 = vmatpush3.bf16.msra.mxu1 %v690_v4  ;;  %v704_v26 = vld [vmem:[#allocation8 + $0x78] sm:$0xff]   ;;  %v706_v28 = vld [vmem:[#allocation11 + $0x8] sm:$0xff]   ;;  %v709_v31 = vld [vmem:[#allocation11 + $0x20] sm:$0xff]  }
  0x88   :  { %618 = vmatprep.subr.bf16.mxu1 %v914_v0  ;;  %635 = vmatpush3.bf16.msra.mxu0 %v697_v11  ;;  %v707_v29 = vld [vmem:[#allocation11 + $0x10] sm:$0xff]   ;;  %v708_v30 = vld [vmem:[#allocation11 + $0x18] sm:$0xff]   ;;  %v710_v32 = vld [vmem:[#allocation11 + $0x28] sm:$0xff]   ;;  %p879_p4 = pnand %p878_p3, %p872_p0 }
  0x89   :  { %636 = vmatprep.subr.bf16.mxu0 %v914_v0  ;;  %v552_v33 = vld [vmem:[#allocation10] ss:$0 sm:$0xff]  ;;  %v711_v41 = vld [vmem:[#allocation11 + $0x30] sm:$0xff]   ;;  %v561_v43 = vld [vmem:[#allocation10 + $0x1] ss:$0 sm:$0xff] }
  0x8a   :  { %v712_v42 = vld [vmem:[#allocation11 + $0x38] sm:$0xff]   ;;  %v570_v51 = vld [vmem:[#allocation13] ss:$0 sm:$0xff] }
  0x8b   :  { %619 = vmatpush3.bf16.msra.mxu1 %v691_v5 }
  0x8c   :  { %620 = vmatprep.subr.bf16.mxu1 %v914_v0  ;;  %637 = vmatpush3.bf16.msra.mxu0 %v698_v12 }
  0x8d   :  { %638 = vmatprep.subr.bf16.mxu0 %v914_v0 }
  0x8f   :  { %621 = vmatpush3.bf16.msra.mxu1 %v692_v6 }
  0x90   :  { %622 = vmatprep.subr.bf16.mxu1 %v914_v0  ;;  %639 = vmatpush3.bf16.msra.mxu0 %v699_v13 }
  0x91   :  { %640 = vmatprep.subr.bf16.mxu0 %v914_v0 }
  0x93   :  { %623 = vmatpush3.bf16.msra.mxu1 %v693_v7 }
  0x94   :  { %624 = vmatprep.subr.bf16.mxu1 %v914_v0  ;;  %641 = vmatpush3.bf16.msra.mxu0 %v700_v14 }
  0x95   :  { %642 = vmatprep.subr.bf16.mxu0 %v914_v0 }
  0x97   :  { %625 = vmatpush3.bf16.msra.mxu1 %v694_v8 }
  0x98   :  { %626 = vmatprep.subr.bf16.mxu1 %v914_v0  ;;  %643 = vmatpush3.bf16.msra.mxu0 %v701_v15 }
  0x99   :  { %644 = vmatprep.subr.bf16.mxu0 %v914_v0 }
  0x9b   :  { %627 = vmatpush3.bf16.msra.mxu1 %v695_v9 }
  0x9c   :  { %628 = vmatprep.subr.bf16.mxu1 %v914_v0  ;;  %645 = vmatpush3.bf16.msra.mxu0 %v702_v16 }
  0x9d   :  { %646 = vmatprep.subr.bf16.mxu0 %v914_v0 }
  0x9f   :  { %629 = vmatpush3.bf16.msra.mxu1 %v696_v10 }
  0xa0   :  { %654 = vmatprep.subr.bf16.mxu1 %v914_v0  ;;  %647 = vmatpush3.bf16.msra.mxu0 %v703_v25 }
  0xa1   :  { %648 = vmatprep.subr.bf16.mxu0 %v914_v0 }
  0xa4   :  { %649 = vmatpush3.bf16.msra.mxu0 %v704_v26 }
 0x159   :  { %v171_v18 = vpop.f32.mrb[0].mxu0 }
 0x15a   :  { %v172_v19 = vadd.f32 %v549_v17, %v171_v18  ;;  %v612_v20 = vpop.f32.mrb[1].mxu0 }
 0x15b   :  { %v174_v21 = vpop.f32.mrb[2].mxu0 }
 0x15c   :  { %v177_v22 = vmax.f32 %v172_v19, 0.0  ;;  %v613_v23 = vpop.f32.mrb[3].mxu0 }
 0x15e   :  { %v178_v24 = vpack.c.bf16 %v177_v22, %v177_v22 }
 0x160   :  { %631 = vmatmul.mubr.bf16.vlgmr.msra.gmra.mrb[0].mxu1 %v178_v24 }
 0x161   :  { %670 = vmatprep.mubr.msk.bf16.mxu1 %vm915_vm0, %v914_v0  ;;  %655 = vmatpush3.bf16.msra.mxu1 %v705_v27 }
 0x162   :  { %656 = vmatprep.subr.bf16.mxu1 %v914_v0 }
 0x165   :  { %657 = vmatpush3.bf16.msra.mxu1 %v706_v28 }
 0x166   :  { %658 = vmatprep.subr.bf16.mxu1 %v914_v0 }
 0x169   :  { %659 = vmatpush3.bf16.msra.mxu1 %v707_v29 }
 0x16a   :  { %660 = vmatprep.subr.bf16.mxu1 %v914_v0 }
 0x16d   :  { %661 = vmatpush3.bf16.msra.mxu1 %v708_v30 }
 0x16e   :  { %662 = vmatprep.subr.bf16.mxu1 %v914_v0 }
 0x171   :  { %663 = vmatpush3.bf16.msra.mxu1 %v709_v31 }
 0x172   :  { %664 = vmatprep.subr.bf16.mxu1 %v914_v0 }
 0x175   :  { %665 = vmatpush3.bf16.msra.mxu1 %v710_v32 }
 0x176   :  { %666 = vmatprep.subr.bf16.mxu1 %v914_v0 }
 0x179   :  { %667 = vmatpush3.bf16.msra.mxu1 %v711_v41 }
 0x17a   :  { %668 = vmatprep.subr.bf16.mxu1 %v914_v0 }
 0x17d   :  { %669 = vmatpush3.bf16.msra.mxu1 %v712_v42 }
 0x233   :  { %v284_v34 = vpop.f32.mrb[0].mxu1 }
 0x234   :  { %v285_v35 = vadd.f32 %v552_v33, %v284_v34  ;;  %v632_v36 = vpop.f32.mrb[1].mxu1 }
 0x235   :  { %v287_v37 = vpop.f32.mrb[2].mxu1 }
 0x236   :  { %v290_v38 = vmax.f32 %v285_v35, 0.0  ;;  %v633_v39 = vpop.f32.mrb[3].mxu1 }
 0x238   :  { %v291_v40 = vpack.c.bf16 %v290_v38, %v290_v38 }
 0x23a   :  { %651 = vmatmul.mubr.bf16.vlgmr.msra.gmra.mrb[4].mxu0 %v291_v40 }
 0x30d   :  { %v399_v44 = vpop.f32.mrb[4].mxu0 }
 0x30e   :  { %v400_v45 = vadd.f32 %v561_v43, %v399_v44  ;;  %v652_v46 = vpop.f32.mrb[5].mxu0 }
 0x30f   :  { %v402_v47 = vpop.f32.mrb[6].mxu0 }
 0x310   :  { %v405_v48 = vmax.f32 %v400_v45, 0.0  ;;  %v653_v49 = vpop.f32.mrb[7].mxu0 }
 0x312   :  { %v406_v50 = vpack.c.bf16 %v405_v48, %v405_v48 }
 0x314   :  { %671 = vmatmul.mubr.bf16.vlgmr.msra.gmra.mrb[4].mxu1 %v406_v50 }
 0x3e7   :  { %v512_v52 = vpop.f32.mrb[4].mxu1 }
 0x3e8   :  { %v513_v53 = vadd.f32 %v570_v51, %v512_v52  ;;  %v672_v54 = vpop.f32.mrb[5].mxu1 }
 0x3e9   :  { %v515_v55 = vpop.f32.mrb[6].mxu1 }
 0x3ea   :  { %v673_v56 = vpop.f32.mrb[7].mxu1  ;;  %v519_v57 = vsel %vm518_vm2, %v513_v53, -inf }
 0x3eb   :  { %520 = vmax.xlane.f32.xlu0 %v519_v57 }
 0x478   :  { %v521_v58 = vpop.xlane.xlu0 %520 }
 0x479   :  { %v522_v59 = vsub.f32 %v513_v53, %v521_v58 }
 0x47b   :  { %v523_v60 = vmul.f32 1.442695, %v522_v59 }
 0x47d   :  { %713 = vpow2.f32 %v523_v60 }
 0x487   :  { %v714_v61 = vpop.eup %713 }
 0x488   :  { %v525_v62 = vsel %vm518_vm2, %v714_v61, 0.0 }
 0x489   :  { %526 = vadd.xlane.f32.xlu0 %v525_v62 }
 0x516   :  { %v527_v63 = vpop.xlane.xlu0 %526 }
 0x517   :  { %715 = vrcp.f32 %v527_v63 }
 0x521   :  { %v716_v0 = vpop.eup %715 }
 0x522   :  { %v529_v1 = vmul.f32 %v716_v0, %v714_v61 }
 0x524   :  { %530 = vst.msk [vmem:[#allocation14] sm:$0x3] %vm518_vm2, %v529_v1 }
 0x525   :  { %882 = shalt.err (!%p879_p4)
}
 0x526   :  { %s883_s17 = scalar_lea.hbm %s1105_s7, 32 }
 0x527   :  { %p884_p5 = scmp.ne.s32.totalorder %s1105_s7, %s883_s17  ;;  %p887_p6 = scmp.lt.u32.totalorder %s883_s17, %s1105_s7 }
 0x529   :  { %p889_p7 = pnand %p887_p6, %p884_p5 }
 0x52b   :  { %892 = shalt.err (!%p889_p7)
}
 0x52c   :  { %540 = dma.vmem_to_hbm [thread:$0]  %s538_s0, 32, %s1105_s7, [#allocation4]  }
 0x52d   :  { %901 = dma.done.wait [#allocation4], 32  }
 0x52e   :  { %902 = vsyncadd [#allocation4], 4294967264 }
 0x52f   :  { %544 = vsyncpa [#allocation3], 1 }
 0x530   :  { %545 = vsyncpa [#allocation6], 1 }
 0x531   :  { %546 = vsyncpa [#allocation9], 1 }
 0x532   :  { %547 = vsyncpa [#allocation12], 1 }
 0x533   :  { %548 = vsyncpa [#allocation4], 1 }

</bundles_post_ra>
